<compile_context>
chip_gen: v7x
topology: tpu7x:2x2x1
jax: 0.10.0
libtpu: 0.0.40
codegen_flags: <defaults>
</compile_context>

<pallas_src>
import math
import functools

import jax
import jax.numpy as jnp
from jax.experimental import pallas as pl
from jax.experimental.pallas import tpu as pltpu

_LANES = 128
_NEG_INF = -1e30                      # finite "minus infinity" (mask-safe)
_VMEM_LIMIT = 32 * 1024 * 1024        # explicit scoped-VMEM cap (v7x-safe)


def _round_up(x: int, m: int) -> int:
    return (x + m - 1) // m * m


# ---------------------------------------------------------------------------
# Tiled, pipelined matmul (x @ w_t): bf16 operands, f32 VMEM accumulator,
# K-reduction grid axis ("arbitrary"), zero-padded to aligned tiles.
# ---------------------------------------------------------------------------

def _matmul_kernel(x_ref, w_ref, o_ref, acc_ref):
    @pl.when(pl.program_id(2) == 0)
    def _():
        acc_ref[...] = jnp.zeros_like(acc_ref)

    acc_ref[...] += jnp.dot(
        x_ref[...], w_ref[...], preferred_element_type=jnp.float32)

    @pl.when(pl.program_id(2) == pl.num_programs(2) - 1)
    def _():
        o_ref[...] = acc_ref[...].astype(o_ref.dtype)


def linear(x2d: jnp.ndarray, w_t: jnp.ndarray, *, out_dtype=None,
           tm=256, tn=256, tk=512):
    """x2d: (M, K); w_t: (K, N) pre-transposed weight.  Returns x2d @ w_t."""
    M, K = x2d.shape
    K2, N = w_t.shape
    assert K == K2
    if out_dtype is None:
        out_dtype = x2d.dtype

    # Full-dim blocks for small dims, else aligned target tiles + zero padding
    # (zero rows/cols contribute nothing to the product).
    tm_ = M if M <= tm else tm          # second-minor dims: 8-aligned targets
    tn_ = N if N <= tn else tn          # minor dims: 128-aligned targets
    tk_ = K if K <= tk else tk
    Mp, Np, Kp = _round_up(M, tm_), _round_up(N, tn_), _round_up(K, tk_)
    if (Mp, Kp) != (M, K):
        x2d = jnp.pad(x2d, ((0, Mp - M), (0, Kp - K)))
    if (Kp, Np) != (K, N):
        w_t = jnp.pad(w_t, ((0, Kp - K), (0, Np - N)))

    grid = (Mp // tm_, Np // tn_, Kp // tk_)
    itemsize = x2d.dtype.itemsize
    out = pl.pallas_call(
        _matmul_kernel,
        out_shape=jax.ShapeDtypeStruct((Mp, Np), out_dtype),
        grid_spec=pltpu.PrefetchScalarGridSpec(
            num_scalar_prefetch=0,
            grid=grid,
            in_specs=[
                pl.BlockSpec((tm_, tk_), lambda i, j, k: (i, k)),
                pl.BlockSpec((tk_, tn_), lambda i, j, k: (k, j)),
            ],
            out_specs=pl.BlockSpec((tm_, tn_), lambda i, j, k: (i, j)),
            scratch_shapes=[pltpu.VMEM((tm_, tn_), jnp.float32)],
        ),
        compiler_params=pltpu.CompilerParams(
            dimension_semantics=("parallel", "parallel", "arbitrary"),
            vmem_limit_bytes=_VMEM_LIMIT),
        cost_estimate=pl.CostEstimate(
            flops=2 * Mp * Np * Kp,
            transcendentals=0,
            bytes_accessed=(Mp * Kp + Kp * Np + Mp * Np) * itemsize),
    )(x2d, w_t)
    if (Mp, Np) != (M, N):
        out = out[:M, :N]
    return out


# ---------------------------------------------------------------------------
# Flash-attention SDPA: online softmax, GQA fold (all n_rep query heads of a
# KV group share one K/V tile), bf16 MXU matmuls with f32 accumulators.
# ---------------------------------------------------------------------------

def _flash_kernel(q_ref, k_ref, v_ref, o_ref, m_ref, l_ref, acc_ref, *,
                  kv_len, need_mask):
    kv_i = pl.program_id(3)

    @pl.when(kv_i == 0)
    def _():
        m_ref[...] = jnp.full_like(m_ref, _NEG_INF)
        l_ref[...] = jnp.zeros_like(l_ref)
        acc_ref[...] = jnp.zeros_like(acc_ref)

    n_rep, tq, d = q_ref.shape[1], q_ref.shape[2], q_ref.shape[3]
    rows = n_rep * tq
    q = q_ref[0].reshape(rows, d)       # (n_rep*tq, D) bf16, pre-scaled
    k = k_ref[0, 0]                     # (tkv, D)
    v = v_ref[0, 0]                     # (tkv, D)

    # q . k^T without an in-kernel transpose: contract on the D axis of both.
    s = jax.lax.dot_general(
        q, k, (((1,), (1,)), ((), ())),
        preferred_element_type=jnp.float32)                   # (rows, tkv)
    if need_mask:                                             # static branch
        col = kv_i * k.shape[0] + jax.lax.broadcasted_iota(
            jnp.int32, s.shape, 1)
        s = jnp.where(col < kv_len, s, _NEG_INF)

    m_prev = m_ref[...]                                       # (rows, 128)
    row_max = jnp.max(s, axis=-1, keepdims=True)              # (rows, 1)
    m_next = jnp.maximum(m_prev, row_max)                     # lane-replicated
    alpha = jnp.exp(m_prev - m_next)                          # lane-replicated
    # Per-row scalars recovered via lane reductions (values are replicated).
    m_next_c = jnp.max(m_next, axis=-1, keepdims=True)        # (rows, 1)
    alpha_c = jnp.max(alpha, axis=-1, keepdims=True)          # (rows, 1)

    p = jnp.exp(s - m_next_c)                                 # (rows, tkv) f32
    l_ref[...] = alpha * l_ref[...] + jnp.sum(p, axis=-1, keepdims=True)
    acc_ref[...] = alpha_c * acc_ref[...] + jnp.dot(
        p.astype(v.dtype), v, preferred_element_type=jnp.float32)
    m_ref[...] = m_next

    # TODO(synk): attn_dropout omitted (config.dropout = 0.0 -> identity).

    @pl.when(kv_i == pl.num_programs(3) - 1)
    def _():
        l_c = jnp.max(l_ref[...], axis=-1, keepdims=True)     # (rows, 1)
        inv_l = pl.reciprocal(l_c, approx=True)               # EUP, ~free
        out = (acc_ref[...] * inv_l).astype(o_ref.dtype)
        o_ref[0] = out.reshape(n_rep, tq, d)


def sdpa(q, k, v, *, n_rep, tq_target=128, tkv_target=512):
    """q: (B, Hq, S, D), pre-scaled by 1/sqrt(D); k, v: (B, Hq//n_rep, S, D)."""
    B, Hq, S, D = q.shape
    n_kv = Hq // n_rep
    assert k.shape == (B, n_kv, S, D) and v.shape == (B, n_kv, S, D)

    # Tile sizes (these land in the second-to-last block dim -> 8-aligned or
    # full).  Pad S with zeros if needed; padded keys are masked in-kernel.
    tq = min(tq_target, _round_up(S, 8))
    s_pad = _round_up(S, tq)
    if s_pad % tkv_target == 0:
        tkv = tkv_target
    else:
        tkv = tq
        for mult in (8, 4, 2):
            cand = tq * mult
            if cand <= tkv_target and s_pad % cand == 0:
                tkv = cand
                break
    need_mask = s_pad != S
    if need_mask:
        pad = ((0, 0), (0, 0), (0, s_pad - S), (0, 0))
        q = jnp.pad(q, pad)
        k = jnp.pad(k, pad)
        v = jnp.pad(v, pad)

    grid = (B, n_kv, s_pad // tq, s_pad // tkv)
    rows = n_rep * tq

    # GQA fold: the Q/O block covers the n_rep contiguous query heads of the
    # KV group h, so each K/V tile is DMA'd exactly once per group.
    q_spec = pl.BlockSpec((1, n_rep, tq, D), lambda b, h, qi, ki: (b, h, qi, 0))
    kv_spec = pl.BlockSpec((1, 1, tkv, D), lambda b, h, qi, ki: (b, h, ki, 0))
    o_spec = pl.BlockSpec((1, n_rep, tq, D), lambda b, h, qi, ki: (b, h, qi, 0))

    itemsize = q.dtype.itemsize
    bytes_accessed = (2 * B * Hq * s_pad * D
                      + 2 * B * n_kv * s_pad * D * (s_pad // tq)) * itemsize
    out = pl.pallas_call(
        functools.partial(_flash_kernel, kv_len=S, need_mask=need_mask),
        out_shape=jax.ShapeDtypeStruct((B, Hq, s_pad, D), q.dtype),
        grid_spec=pltpu.PrefetchScalarGridSpec(
            num_scalar_prefetch=0,
            grid=grid,
            in_specs=[q_spec, kv_spec, kv_spec],
            out_specs=o_spec,
            scratch_shapes=[
                pltpu.VMEM((rows, _LANES), jnp.float32),  # running max (lane-replicated)
                pltpu.VMEM((rows, _LANES), jnp.float32),  # running denom (lane-replicated)
                pltpu.VMEM((rows, D), jnp.float32),       # output accumulator
            ],
        ),
        compiler_params=pltpu.CompilerParams(
            dimension_semantics=("parallel", "parallel", "parallel",
                                 "arbitrary"),
            vmem_limit_bytes=_VMEM_LIMIT),
        cost_estimate=pl.CostEstimate(
            flops=4 * B * Hq * s_pad * s_pad * D,
            transcendentals=B * Hq * s_pad * s_pad,
            bytes_accessed=bytes_accessed),
    )(q, k, v)
    if need_mask:
        out = out[:, :, :S, :]
    return out


# ---------------------------------------------------------------------------
# Plain-JAX glue (RoPE with the reference's interleaved-pair semantics)
# ---------------------------------------------------------------------------

def apply_rotary_emb(q, k, head_dim, max_seq_len, theta=10000.0):
    """q: (B, S, Hq, D); k: (B, S, Hkv, D).  Interleaved real/imag pairs."""
    seqlen = q.shape[1]
    inv_freq = 1.0 / (
        theta ** (jnp.arange(0, head_dim, 2, dtype=jnp.float32) / head_dim))
    t = jnp.arange(max_seq_len, dtype=jnp.float32)
    freqs = jnp.outer(t, inv_freq)[:seqlen]          # (S, D/2)
    cos = jnp.cos(freqs)[None, :, None, :]
    sin = jnp.sin(freqs)[None, :, None, :]

    def rot(x):
        xf = x.astype(jnp.float32)
        xp = xf.reshape(*x.shape[:-1], head_dim // 2, 2)
        xr, xi = xp[..., 0], xp[..., 1]
        out_r = xr * cos - xi * sin
        out_i = xr * sin + xi * cos
        return jnp.stack([out_r, out_i], axis=-1).reshape(x.shape)

    # TODO(synk): RoPE + the head-major transpose could be fused into a Pallas
    # pass (pltpu.roll swizzle) to remove extra HBM round trips; kept in plain
    # JAX to preserve the exact interleaved-pair reference semantics.
    return rot(q), rot(k)


def init_params(wq, wk, wv, wo, compute_dtype=jnp.bfloat16):
    """Torch nn.Linear weights (out, in) -> fused, pre-transposed bf16 params."""
    wqkv_t = jnp.concatenate(
        [jnp.transpose(wq), jnp.transpose(wk), jnp.transpose(wv)], axis=1)
    return {
        "wqkv_t": wqkv_t.astype(compute_dtype),   # (dim, (Hq + 2*Hkv) * D)
        "wo_t": jnp.transpose(wo).astype(compute_dtype),
    }


def attention_forward(params, x, *, n_heads, n_kv_heads, max_seq_len,
                      compute_dtype=jnp.bfloat16):
    B, S, dim = x.shape
    head_dim = dim // n_heads
    n_rep = n_heads // n_kv_heads
    nq = n_heads * head_dim
    nkv = n_kv_heads * head_dim

    # Fused QKV projection: bf16 operands on the MXU, f32 accumulation.
    x2d = x.reshape(B * S, dim).astype(compute_dtype)
    qkv = linear(x2d, params["wqkv_t"], out_dtype=compute_dtype)
    query = qkv[:, :nq].reshape(B, S, n_heads, head_dim)
    key = qkv[:, nq:nq + nkv].reshape(B, S, n_kv_heads, head_dim)
    value = qkv[:, nq + nkv:].reshape(B, S, n_kv_heads, head_dim)

    # RoPE in f32 (reference interleaved-pair semantics).
    query, key = apply_rotary_emb(query, key, head_dim, max_seq_len)

    # Softmax scale folded into the bf16 cast of Q (fuses with the transpose
    # pass) so the flash kernel never scales the (rows, tkv) score tile.
    scale = 1.0 / math.sqrt(head_dim)
    # TODO(synk): the slice/reshape/transpose layout passes below could be
    # removed by writing Q/K/V head-major straight from the projection kernel.
    query = jnp.transpose(query * scale, (0, 2, 1, 3)).astype(compute_dtype)
    key = jnp.transpose(key, (0, 2, 1, 3)).astype(compute_dtype)
    value = jnp.transpose(value, (0, 2, 1, 3))            # already bf16

    out = sdpa(query, key, value, n_rep=n_rep)            # (B, Hq, S, D) bf16
    out = jnp.transpose(out, (0, 2, 1, 3)).reshape(B * S, nq)
    out = linear(out, params["wo_t"], out_dtype=x.dtype)
    # TODO(synk): resid_dropout omitted (config.dropout = 0.0 -> identity).
    return out.reshape(B, S, dim)


# ---------------------------------------------------------------------------
# Pure-JAX f32 reference (mirrors the PyTorch module) for a sanity check
# ---------------------------------------------------------------------------

def _reference_forward(wq, wk, wv, wo, x, *, n_heads, n_kv_heads, max_seq_len):
    B, S, dim = x.shape
    head_dim = dim // n_heads
    n_rep = n_heads // n_kv_heads
    x2d = x.reshape(B * S, dim)
    q = (x2d @ wq.T).reshape(B, S, n_heads, head_dim)
    k = (x2d @ wk.T).reshape(B, S, n_kv_heads, head_dim)
    v = (x2d @ wv.T).reshape(B, S, n_kv_heads, head_dim)
    q, k = apply_rotary_emb(q, k, head_dim, max_seq_len)
    k = jnp.repeat(k, n_rep, axis=2)
    v = jnp.repeat(v, n_rep, axis=2)
    q = jnp.transpose(q, (0, 2, 1, 3))
    k = jnp.transpose(k, (0, 2, 1, 3))
    v = jnp.transpose(v, (0, 2, 1, 3))
    scores = jnp.einsum("bhqd,bhkd->bhqk", q, k) / math.sqrt(head_dim)
    attn = jax.nn.softmax(scores, axis=-1)
    out = jnp.einsum("bhqk,bhkd->bhqd", attn, v)
    out = jnp.transpose(out, (0, 2, 1, 3)).reshape(B * S, n_heads * head_dim)
    return (out @ wo.T).reshape(B, S, dim)


# ---------------------------------------------------------------------------
# Main
# ---------------------------------------------------------------------------

if __name__ == "__main__":
    # Small Llama-like config
    batch_size = 2
    seqlen = 8
    dim = 32
    n_heads = 4
    n_kv_heads = 2
    max_seq_len = 16
    head_dim = dim // n_heads

    key = jax.random.PRNGKey(0)
    kx, kq, kk, kv, ko = jax.random.split(key, 5)

    x = jax.random.normal(kx, (batch_size, seqlen, dim), dtype=jnp.float32)
    wq = 0.02 * jax.random.normal(kq, (n_heads * head_dim, dim), jnp.float32)
    wk = 0.02 * jax.random.normal(kk, (n_kv_heads * head_dim, dim), jnp.float32)
    wv = 0.02 * jax.random.normal(kv, (n_kv_heads * head_dim, dim), jnp.float32)
    wo = 0.02 * jax.random.normal(ko, (dim, n_heads * head_dim), jnp.float32)

    params = init_params(wq, wk, wv, wo)

    fwd = jax.jit(functools.partial(
        attention_forward, n_heads=n_heads, n_kv_heads=n_kv_heads,
        max_seq_len=max_seq_len))
    out = fwd(params, x)
    jax.block_until_ready(out)
    assert out.shape == (batch_size, seqlen, dim)

    ref = _reference_forward(
        wq, wk, wv, wo, x, n_heads=n_heads, n_kv_heads=n_kv_heads,
        max_seq_len=max_seq_len)
    assert jnp.allclose(out, ref, rtol=2e-2, atol=2e-3), float(
        jnp.max(jnp.abs(out - ref)))

    print("KERNEL_OK")
</pallas_src>

<mosaic_0001>
module attributes {stable_mosaic.version = 11 : i64} {
  func.func @_matmul_kernel(%arg0: i32, %arg1: i32, %arg2: i32, %arg3: memref<16x32xbf16, #tpu.memory_space<vmem>>, %arg4: memref<32x64xbf16, #tpu.memory_space<vmem>>, %arg5: memref<16x64xbf16, #tpu.memory_space<vmem>>, %arg6: memref<16x64xf32, #tpu.memory_space<vmem>>) attributes {dimension_semantics = [#tpu.dimension_semantics<parallel>, #tpu.dimension_semantics<parallel>, #tpu.dimension_semantics<arbitrary>], iteration_bounds = array<i64: 1, 1, 1>, scalar_prefetch = 0 : i64, scratch_operands = 1 : i64, tpu.core_type = #tpu.core_type<tc>, window_params = [{transform_indices = @transform_0, window_bounds = array<i64: 16, 32>}, {transform_indices = @transform_1, window_bounds = array<i64: 32, 64>}, {transform_indices = @transform_2, window_bounds = array<i64: 16, 64>}]} {
    %c0_i32 = arith.constant 0 : i32
    %0 = arith.cmpi eq, %arg2, %c0_i32 : i32
    %1 = arith.extui %0 : i1 to i32
    %c0_i32_0 = arith.constant 0 : i32
    %2 = arith.cmpi ne, %1, %c0_i32_0 : i32
    scf.if %2 {
      %cst_10 = arith.constant 0.000000e+00 : f32
      %12 = vector.broadcast %cst_10 : f32 to vector<16x64xf32>
      %c0_11 = arith.constant 0 : index
      %c0_12 = arith.constant 0 : index
      %13 = vector.load %arg6[%c0_11, %c0_12] : memref<16x64xf32, #tpu.memory_space<vmem>>, vector<16x64xf32>
      tpu.vector_store %arg6[%c0_11, %c0_12], %12 {strides = array<i32>} : memref<16x64xf32, #tpu.memory_space<vmem>>, vector<16x64xf32>,
    } else {
    }
    %c0 = arith.constant 0 : index
    %c0_1 = arith.constant 0 : index
    %3 = vector.load %arg6[%c0, %c0_1] : memref<16x64xf32, #tpu.memory_space<vmem>>, vector<16x64xf32>
    %c0_2 = arith.constant 0 : index
    %c0_3 = arith.constant 0 : index
    %4 = vector.load %arg3[%c0_2, %c0_3] : memref<16x32xbf16, #tpu.memory_space<vmem>>, vector<16x32xbf16>
    %c0_4 = arith.constant 0 : index
    %c0_5 = arith.constant 0 : index
    %5 = vector.load %arg4[%c0_4, %c0_5] : memref<32x64xbf16, #tpu.memory_space<vmem>>, vector<32x64xbf16>
    %cst = arith.constant dense<0.000000e+00> : vector<16x64xf32>
    %6 = tpu.matmul %4, %5, %cst {dimension_numbers = #tpu.dot_dimension_numbers<[1], [0], [0], [1], [0, 0, 1, 1], [], []>} : vector<16x32xbf16>, vector<32x64xbf16>, vector<16x64xf32> -> vector<16x64xf32>
    %7 = arith.addf %3, %6 : vector<16x64xf32>
    %c0_6 = arith.constant 0 : index
    %c0_7 = arith.constant 0 : index
    %8 = vector.load %arg6[%c0_6, %c0_7] : memref<16x64xf32, #tpu.memory_space<vmem>>, vector<16x64xf32>
    tpu.vector_store %arg6[%c0_6, %c0_7], %7 {strides = array<i32>} : memref<16x64xf32, #tpu.memory_space<vmem>>, vector<16x64xf32>,
    %c0_i32_8 = arith.constant 0 : i32
    %9 = arith.cmpi eq, %arg2, %c0_i32_8 : i32
    %10 = arith.extui %9 : i1 to i32
    %c0_i32_9 = arith.constant 0 : i32
    %11 = arith.cmpi ne, %10, %c0_i32_9 : i32
    scf.if %11 {
      %c0_10 = arith.constant 0 : index
      %c0_11 = arith.constant 0 : index
      %12 = vector.load %arg6[%c0_10, %c0_11] : memref<16x64xf32, #tpu.memory_space<vmem>>, vector<16x64xf32>
      %13 = arith.truncf %12 : vector<16x64xf32> to vector<16x64xbf16>
      %c0_12 = arith.constant 0 : index
      %c0_13 = arith.constant 0 : index
      %14 = vector.load %arg5[%c0_12, %c0_13] : memref<16x64xbf16, #tpu.memory_space<vmem>>, vector<16x64xbf16>
      tpu.vector_store %arg5[%c0_12, %c0_13], %13 {strides = array<i32>} : memref<16x64xbf16, #tpu.memory_space<vmem>>, vector<16x64xbf16>,
    } else {
    }
    return
  }
  func.func @transform_0(%arg0: i32, %arg1: i32, %arg2: i32) -> (i32, i32) {
    %c0_i32 = arith.constant 0 : i32
    return %arg0, %arg2 : i32, i32
  }
  func.func @transform_1(%arg0: i32, %arg1: i32, %arg2: i32) -> (i32, i32) {
    %c0_i32 = arith.constant 0 : i32
    return %arg2, %arg1 : i32, i32
  }
  func.func @transform_2(%arg0: i32, %arg1: i32, %arg2: i32) -> (i32, i32) {
    %c0_i32 = arith.constant 0 : i32
    return %arg0, %arg1 : i32, i32
  }
}

module attributes {stable_mosaic.version = 11 : i64} {
  func.func @_flash_kernel(%arg0: i32, %arg1: i32, %arg2: i32, %arg3: i32, %arg4: memref<1x2x8x8xbf16, #tpu.memory_space<vmem>>, %arg5: memref<1x1x8x8xbf16, #tpu.memory_space<vmem>>, %arg6: memref<1x1x8x8xbf16, #tpu.memory_space<vmem>>, %arg7: memref<1x2x8x8xbf16, #tpu.memory_space<vmem>>, %arg8: memref<16x128xf32, #tpu.memory_space<vmem>>, %arg9: memref<16x128xf32, #tpu.memory_space<vmem>>, %arg10: memref<16x8xf32, #tpu.memory_space<vmem>>) attributes {dimension_semantics = [#tpu.dimension_semantics<parallel>, #tpu.dimension_semantics<parallel>, #tpu.dimension_semantics<parallel>, #tpu.dimension_semantics<arbitrary>], iteration_bounds = array<i64: 2, 2, 1, 1>, scalar_prefetch = 0 : i64, scratch_operands = 3 : i64, tpu.core_type = #tpu.core_type<tc>, window_params = [{transform_indices = @transform_0, window_bounds = array<i64: 1, 2, 8, 8>}, {transform_indices = @transform_1, window_bounds = array<i64: 1, 1, 8, 8>}, {transform_indices = @transform_2, window_bounds = array<i64: 1, 1, 8, 8>}, {transform_indices = @transform_3, window_bounds = array<i64: 1, 2, 8, 8>}]} {
    %c0_i32 = arith.constant 0 : i32
    %0 = arith.cmpi eq, %arg3, %c0_i32 : i32
    %1 = arith.extui %0 : i1 to i32
    %c0_i32_0 = arith.constant 0 : i32
    %2 = arith.cmpi ne, %1, %c0_i32_0 : i32
    scf.if %2 {
      %cst_31 = arith.constant -1.000000e+30 : f32
      %43 = vector.broadcast %cst_31 : f32 to vector<16x128xf32>
      %c0_32 = arith.constant 0 : index
      %c0_33 = arith.constant 0 : index
      %44 = vector.load %arg8[%c0_32, %c0_33] : memref<16x128xf32, #tpu.memory_space<vmem>>, vector<16x128xf32>
      tpu.vector_store %arg8[%c0_32, %c0_33], %43 {strides = array<i32>} : memref<16x128xf32, #tpu.memory_space<vmem>>, vector<16x128xf32>,
      %cst_34 = arith.constant 0.000000e+00 : f32
      %45 = vector.broadcast %cst_34 : f32 to vector<16x128xf32>
      %c0_35 = arith.constant 0 : index
      %c0_36 = arith.constant 0 : index
      %46 = vector.load %arg9[%c0_35, %c0_36] : memref<16x128xf32, #tpu.memory_space<vmem>>, vector<16x128xf32>
      tpu.vector_store %arg9[%c0_35, %c0_36], %45 {strides = array<i32>} : memref<16x128xf32, #tpu.memory_space<vmem>>, vector<16x128xf32>,
      %cst_37 = arith.constant 0.000000e+00 : f32
      %47 = vector.broadcast %cst_37 : f32 to vector<16x8xf32>
      %c0_38 = arith.constant 0 : index
      %c0_39 = arith.constant 0 : index
      %48 = vector.load %arg10[%c0_38, %c0_39] : memref<16x8xf32, #tpu.memory_space<vmem>>, vector<16x8xf32>
      tpu.vector_store %arg10[%c0_38, %c0_39], %47 {strides = array<i32>} : memref<16x8xf32, #tpu.memory_space<vmem>>, vector<16x8xf32>,
    } else {
    }
    %c0 = arith.constant 0 : index
    %c0_1 = arith.constant 0 : index
    %c0_2 = arith.constant 0 : index
    %c0_3 = arith.constant 0 : index
    %3 = vector.load %arg4[%c0, %c0_1, %c0_2, %c0_3] : memref<1x2x8x8xbf16, #tpu.memory_space<vmem>>, vector<1x2x8x8xbf16>
    %4 = vector.shape_cast %3 : vector<1x2x8x8xbf16> to vector<2x8x8xbf16>
    %5 = vector.shape_cast %4 : vector<2x8x8xbf16> to vector<16x8xbf16>
    %c0_4 = arith.constant 0 : index
    %c0_5 = arith.constant 0 : index
    %c0_6 = arith.constant 0 : index
    %c0_7 = arith.constant 0 : index
    %6 = vector.load %arg5[%c0_4, %c0_5, %c0_6, %c0_7] : memref<1x1x8x8xbf16, #tpu.memory_space<vmem>>, vector<1x1x8x8xbf16>
    %7 = vector.shape_cast %6 : vector<1x1x8x8xbf16> to vector<8x8xbf16>
    %c0_8 = arith.constant 0 : index
    %c0_9 = arith.constant 0 : index
    %c0_10 = arith.constant 0 : index
    %c0_11 = arith.constant 0 : index
    %8 = vector.load %arg6[%c0_8, %c0_9, %c0_10, %c0_11] : memref<1x1x8x8xbf16, #tpu.memory_space<vmem>>, vector<1x1x8x8xbf16>
    %9 = vector.shape_cast %8 : vector<1x1x8x8xbf16> to vector<8x8xbf16>
    %cst = arith.constant dense<0.000000e+00> : vector<16x8xf32>
    %10 = tpu.matmul %5, %7, %cst {dimension_numbers = #tpu.dot_dimension_numbers<[1], [1], [0], [0], [0, 0, 1, 0], [], []>} : vector<16x8xbf16>, vector<8x8xbf16>, vector<16x8xf32> -> vector<16x8xf32>
    %c0_12 = arith.constant 0 : index
    %c0_13 = arith.constant 0 : index
    %11 = vector.load %arg8[%c0_12, %c0_13] : memref<16x128xf32, #tpu.memory_space<vmem>>, vector<16x128xf32>
    %cst_14 = arith.constant dense<0xFF800000> : vector<16xf32>
    %12 = vector.multi_reduction <maximumf>, %10, %cst_14 [1] : vector<16x8xf32> to vector<16xf32>
    %13 = vector.shape_cast %12 : vector<16xf32> to vector<16x1xf32>
    %14 = vector.broadcast %13 : vector<16x1xf32> to vector<16x128xf32>
    %15 = arith.maximumf %11, %14 : vector<16x128xf32>
    %16 = arith.subf %11, %15 : vector<16x128xf32>
    %17 = math.exp %16 : vector<16x128xf32>
    %cst_15 = arith.constant dense<0xFF800000> : vector<16xf32>
    %18 = vector.multi_reduction <maximumf>, %15, %cst_15 [1] : vector<16x128xf32> to vector<16xf32>
    %19 = vector.shape_cast %18 : vector<16xf32> to vector<16x1xf32>
    %cst_16 = arith.constant dense<0xFF800000> : vector<16xf32>
    %20 = vector.multi_reduction <maximumf>, %17, %cst_16 [1] : vector<16x128xf32> to vector<16xf32>
    %21 = vector.shape_cast %20 : vector<16xf32> to vector<16x1xf32>
    %22 = vector.broadcast %19 : vector<16x1xf32> to vector<16x8xf32>
    %23 = arith.subf %10, %22 : vector<16x8xf32>
    %24 = math.exp %23 : vector<16x8xf32>
    %c0_17 = arith.constant 0 : index
    %c0_18 = arith.constant 0 : index
    %25 = vector.load %arg9[%c0_17, %c0_18] : memref<16x128xf32, #tpu.memory_space<vmem>>, vector<16x128xf32>
    %26 = arith.mulf %17, %25 : vector<16x128xf32>
    %cst_19 = arith.constant dense<0.000000e+00> : vector<16xf32>
    %27 = vector.multi_reduction <add>, %24, %cst_19 [1] : vector<16x8xf32> to vector<16xf32>
    %28 = vector.shape_cast %27 : vector<16xf32> to vector<16x1xf32>
    %29 = vector.broadcast %28 : vector<16x1xf32> to vector<16x128xf32>
    %30 = arith.addf %26, %29 : vector<16x128xf32>
    %c0_20 = arith.constant 0 : index
    %c0_21 = arith.constant 0 : index
    %31 = vector.load %arg9[%c0_20, %c0_21] : memref<16x128xf32, #tpu.memory_space<vmem>>, vector<16x128xf32>
    tpu.vector_store %arg9[%c0_20, %c0_21], %30 {strides = array<i32>} : memref<16x128xf32, #tpu.memory_space<vmem>>, vector<16x128xf32>,
    %c0_22 = arith.constant 0 : index
    %c0_23 = arith.constant 0 : index
    %32 = vector.load %arg10[%c0_22, %c0_23] : memref<16x8xf32, #tpu.memory_space<vmem>>, vector<16x8xf32>
    %33 = vector.broadcast %21 : vector<16x1xf32> to vector<16x8xf32>
    %34 = arith.mulf %33, %32 : vector<16x8xf32>
    %35 = arith.truncf %24 : vector<16x8xf32> to vector<16x8xbf16>
    %cst_24 = arith.constant dense<0.000000e+00> : vector<16x8xf32>
    %36 = tpu.matmul %35, %9, %cst_24 {dimension_numbers = #tpu.dot_dimension_numbers<[1], [0], [0], [1], [0, 0, 1, 1], [], []>} : vector<16x8xbf16>, vector<8x8xbf16>, vector<16x8xf32> -> vector<16x8xf32>
    %37 = arith.addf %34, %36 : vector<16x8xf32>
    %c0_25 = arith.constant 0 : index
    %c0_26 = arith.constant 0 : index
    %38 = vector.load %arg10[%c0_25, %c0_26] : memref<16x8xf32, #tpu.memory_space<vmem>>, vector<16x8xf32>
    tpu.vector_store %arg10[%c0_25, %c0_26], %37 {strides = array<i32>} : memref<16x8xf32, #tpu.memory_space<vmem>>, vector<16x8xf32>,
    %c0_27 = arith.constant 0 : index
    %c0_28 = arith.constant 0 : index
    %39 = vector.load %arg8[%c0_27, %c0_28] : memref<16x128xf32, #tpu.memory_space<vmem>>, vector<16x128xf32>
    tpu.vector_store %arg8[%c0_27, %c0_28], %15 {strides = array<i32>} : memref<16x128xf32, #tpu.memory_space<vmem>>, vector<16x128xf32>,
    %c0_i32_29 = arith.constant 0 : i32
    %40 = arith.cmpi eq, %arg3, %c0_i32_29 : i32
    %41 = arith.extui %40 : i1 to i32
    %c0_i32_30 = arith.constant 0 : i32
    %42 = arith.cmpi ne, %41, %c0_i32_30 : i32
    scf.if %42 {
      %c0_31 = arith.constant 0 : index
      %c0_32 = arith.constant 0 : index
      %43 = vector.load %arg9[%c0_31, %c0_32] : memref<16x128xf32, #tpu.memory_space<vmem>>, vector<16x128xf32>
      %cst_33 = arith.constant dense<0xFF800000> : vector<16xf32>
      %44 = vector.multi_reduction <maximumf>, %43, %cst_33 [1] : vector<16x128xf32> to vector<16xf32>
      %45 = vector.shape_cast %44 : vector<16xf32> to vector<16x1xf32>
      %46 = tpu.reciprocal %45 {approx = true} : vector<16x1xf32> -> vector<16x1xf32>
      %c0_34 = arith.constant 0 : index
      %c0_35 = arith.constant 0 : index
      %47 = vector.load %arg10[%c0_34, %c0_35] : memref<16x8xf32, #tpu.memory_space<vmem>>, vector<16x8xf32>
      %48 = vector.broadcast %46 : vector<16x1xf32> to vector<16x8xf32>
      %49 = arith.mulf %47, %48 : vector<16x8xf32>
      %50 = arith.truncf %49 : vector<16x8xf32> to vector<16x8xbf16>
      %51 = vector.shape_cast %50 : vector<16x8xbf16> to vector<2x8x8xbf16>
      %c0_36 = arith.constant 0 : index
      %c0_37 = arith.constant 0 : index
      %c0_38 = arith.constant 0 : index
      %c0_39 = arith.constant 0 : index
      %52 = vector.load %arg7[%c0_36, %c0_37, %c0_38, %c0_39] : memref<1x2x8x8xbf16, #tpu.memory_space<vmem>>, vector<1x2x8x8xbf16>
      %53 = vector.shape_cast %52 : vector<1x2x8x8xbf16> to vector<2x8x8xbf16>
      %54 = vector.shape_cast %51 : vector<2x8x8xbf16> to vector<1x2x8x8xbf16>
      tpu.vector_store %arg7[%c0_36, %c0_37, %c0_38, %c0_39], %54 {strides = array<i32>} : memref<1x2x8x8xbf16, #tpu.memory_space<vmem>>, vector<1x2x8x8xbf16>,
    } else {
    }
    return
  }
  func.func @transform_0(%arg0: i32, %arg1: i32, %arg2: i32, %arg3: i32) -> (i32, i32, i32, i32) {
    %c0_i32 = arith.constant 0 : i32
    %c0_i32_0 = arith.constant 0 : i32
    return %arg0, %arg1, %arg2, %c0_i32 : i32, i32, i32, i32
  }
  func.func @transform_1(%arg0: i32, %arg1: i32, %arg2: i32, %arg3: i32) -> (i32, i32, i32, i32) {
    %c0_i32 = arith.constant 0 : i32
    %c0_i32_0 = arith.constant 0 : i32
    return %arg0, %arg1, %arg3, %c0_i32 : i32, i32, i32, i32
  }
  func.func @transform_2(%arg0: i32, %arg1: i32, %arg2: i32, %arg3: i32) -> (i32, i32, i32, i32) {
    %c0_i32 = arith.constant 0 : i32
    %c0_i32_0 = arith.constant 0 : i32
    return %arg0, %arg1, %arg3, %c0_i32 : i32, i32, i32, i32
  }
  func.func @transform_3(%arg0: i32, %arg1: i32, %arg2: i32, %arg3: i32) -> (i32, i32, i32, i32) {
    %c0_i32 = arith.constant 0 : i32
    %c0_i32_0 = arith.constant 0 : i32
    return %arg0, %arg1, %arg2, %c0_i32 : i32, i32, i32, i32
  }
}

module attributes {stable_mosaic.version = 11 : i64} {
  func.func @_matmul_kernel(%arg0: i32, %arg1: i32, %arg2: i32, %arg3: memref<16x32xbf16, #tpu.memory_space<vmem>>, %arg4: memref<32x32xbf16, #tpu.memory_space<vmem>>, %arg5: memref<16x32xf32, #tpu.memory_space<vmem>>, %arg6: memref<16x32xf32, #tpu.memory_space<vmem>>) attributes {dimension_semantics = [#tpu.dimension_semantics<parallel>, #tpu.dimension_semantics<parallel>, #tpu.dimension_semantics<arbitrary>], iteration_bounds = array<i64: 1, 1, 1>, scalar_prefetch = 0 : i64, scratch_operands = 1 : i64, tpu.core_type = #tpu.core_type<tc>, window_params = [{transform_indices = @transform_0, window_bounds = array<i64: 16, 32>}, {transform_indices = @transform_1, window_bounds = array<i64: 32, 32>}, {transform_indices = @transform_2, window_bounds = array<i64: 16, 32>}]} {
    %c0_i32 = arith.constant 0 : i32
    %0 = arith.cmpi eq, %arg2, %c0_i32 : i32
    %1 = arith.extui %0 : i1 to i32
    %c0_i32_0 = arith.constant 0 : i32
    %2 = arith.cmpi ne, %1, %c0_i32_0 : i32
    scf.if %2 {
      %cst_10 = arith.constant 0.000000e+00 : f32
      %12 = vector.broadcast %cst_10 : f32 to vector<16x32xf32>
      %c0_11 = arith.constant 0 : index
      %c0_12 = arith.constant 0 : index
      %13 = vector.load %arg6[%c0_11, %c0_12] : memref<16x32xf32, #tpu.memory_space<vmem>>, vector<16x32xf32>
      tpu.vector_store %arg6[%c0_11, %c0_12], %12 {strides = array<i32>} : memref<16x32xf32, #tpu.memory_space<vmem>>, vector<16x32xf32>,
    } else {
    }
    %c0 = arith.constant 0 : index
    %c0_1 = arith.constant 0 : index
    %3 = vector.load %arg6[%c0, %c0_1] : memref<16x32xf32, #tpu.memory_space<vmem>>, vector<16x32xf32>
    %c0_2 = arith.constant 0 : index
    %c0_3 = arith.constant 0 : index
    %4 = vector.load %arg3[%c0_2, %c0_3] : memref<16x32xbf16, #tpu.memory_space<vmem>>, vector<16x32xbf16>
    %c0_4 = arith.constant 0 : index
    %c0_5 = arith.constant 0 : index
    %5 = vector.load %arg4[%c0_4, %c0_5] : memref<32x32xbf16, #tpu.memory_space<vmem>>, vector<32x32xbf16>
    %cst = arith.constant dense<0.000000e+00> : vector<16x32xf32>
    %6 = tpu.matmul %4, %5, %cst {dimension_numbers = #tpu.dot_dimension_numbers<[1], [0], [0], [1], [0, 0, 1, 1], [], []>} : vector<16x32xbf16>, vector<32x32xbf16>, vector<16x32xf32> -> vector<16x32xf32>
    %7 = arith.addf %3, %6 : vector<16x32xf32>
    %c0_6 = arith.constant 0 : index
    %c0_7 = arith.constant 0 : index
    %8 = vector.load %arg6[%c0_6, %c0_7] : memref<16x32xf32, #tpu.memory_space<vmem>>, vector<16x32xf32>
    tpu.vector_store %arg6[%c0_6, %c0_7], %7 {strides = array<i32>} : memref<16x32xf32, #tpu.memory_space<vmem>>, vector<16x32xf32>,
    %c0_i32_8 = arith.constant 0 : i32
    %9 = arith.cmpi eq, %arg2, %c0_i32_8 : i32
    %10 = arith.extui %9 : i1 to i32
    %c0_i32_9 = arith.constant 0 : i32
    %11 = arith.cmpi ne, %10, %c0_i32_9 : i32
    scf.if %11 {
      %c0_10 = arith.constant 0 : index
      %c0_11 = arith.constant 0 : index
      %12 = vector.load %arg6[%c0_10, %c0_11] : memref<16x32xf32, #tpu.memory_space<vmem>>, vector<16x32xf32>
      %c0_12 = arith.constant 0 : index
      %c0_13 = arith.constant 0 : index
      %13 = vector.load %arg5[%c0_12, %c0_13] : memref<16x32xf32, #tpu.memory_space<vmem>>, vector<16x32xf32>
      tpu.vector_store %arg5[%c0_12, %c0_13], %12 {strides = array<i32>} : memref<16x32xf32, #tpu.memory_space<vmem>>, vector<16x32xf32>,
    } else {
    }
    return
  }
  func.func @transform_0(%arg0: i32, %arg1: i32, %arg2: i32) -> (i32, i32) {
    %c0_i32 = arith.constant 0 : i32
    return %arg0, %arg2 : i32, i32
  }
  func.func @transform_1(%arg0: i32, %arg1: i32, %arg2: i32) -> (i32, i32) {
    %c0_i32 = arith.constant 0 : i32
    return %arg2, %arg1 : i32, i32
  }
  func.func @transform_2(%arg0: i32, %arg1: i32, %arg2: i32) -> (i32, i32) {
    %c0_i32 = arith.constant 0 : i32
    return %arg0, %arg1 : i32, i32
  }
}

</mosaic_0001>

<bundles_post_ra>
// kernel: attention_forward.3
= control target key start
LH: loop header
LB: loop body
LE: loop exit
PB: predicated region body
PF: predicated region fallthrough
CT: control target
= control target key end

     0   :  { %vm16_vm0 = vcmask 523264   ;;  %v138_v0 = vmov 0.0   ;;  %vm139_vm1 = vmmov 0   ;;  %vm44_vm2 = vcmask 261120   ;;  %s174_s1 = inlined_call_operand.vmem [shape: bf16[32,64], index: 1, kind: input, shape index: {}]   ;;  %s175_s0 = inlined_call_operand.vmem [shape: bf16[16,32], index: 0, kind: input, shape index: {}]   ;;  %s176_s2 = inlined_call_operand.vmem [shape: bf16[16,64], index: 2, kind: output, shape index: {}]  }
   0x1   :  { %125 = vmatprep.subr.bf16.mxu0 %v138_v0  ;;  %v135_v1 = vld [vmem:[%s174_s1] sm:$0xff]   ;;  %129 = vmatprep.mubr.msk.bf16.mxu0 %vm139_vm1, %v138_v0  ;;  %17 = vst.msk [vmem:[#allocation2] sm:$0xff] %vm16_vm0, %v138_v0  ;;  %18 = vst.msk [vmem:[#allocation2 + $0x8] sm:$0xff] %vm16_vm0, %v138_v0  ;;  %v136_v2 = vld [vmem:[%s174_s1 + $0x8] sm:$0xff]   ;;  %vm107_vm3 = vcmask 519168  }
   0x2   :  { %126 = vmatpush3.bf16.msra.mxu0 %v135_v1  ;;  %v137_v3 = vld [vmem:[%s175_s0] sm:$0xff]  }
   0x3   :  { %127 = vmatprep.subr.bf16.mxu0 %v138_v0 }
   0x6   :  { %128 = vmatpush3.bf16.msra.mxu0 %v136_v2 }
   0x8   :  { %v19_v4 = vld [vmem:[#allocation2] sm:$0xff]  ;;  %v20_v6 = vld [vmem:[#allocation2 + $0x8] sm:$0xff] }
   0x9   :  { %130 = vmatmul.mubr.msk.bf16.vlgmr.msra.gmra.mrb[0].mxu0 %vm44_vm2, %v137_v3 }
  0xdc   :  { %v82_v5 = vpop.f32.mrb[0].mxu0 }
  0xdd   :  { %v89_v7 = vadd.f32 %v82_v5, %v19_v4  ;;  %v131_v8 = vpop.f32.mrb[1].mxu0 }
  0xde   :  { %v85_v9 = vpop.f32.mrb[2].mxu0 }
  0xdf   :  { %92 = vst.msk [vmem:[#allocation2] sm:$0xff] %vm16_vm0, %v89_v7  ;;  %v90_v10 = vadd.f32 %v85_v9, %v20_v6  ;;  %v132_v11 = vpop.f32.mrb[3].mxu0 }
  0xe1   :  { %93 = vst.msk [vmem:[#allocation2 + $0x8] sm:$0xff] %vm16_vm0, %v90_v10 }
  0xe6   :  { %v97_v12 = vld [vmem:[#allocation2] sm:$0xff] }
  0xe7   :  { %v120_v13 = vpack.c.bf16 %v97_v12, %v97_v12 }
  0xe8   :  { %v98_v14 = vld [vmem:[#allocation2 + $0x8] sm:$0xff] }
  0xe9   :  { %108 = vst.msk [vmem:[%s176_s2] sm:$0xf] %vm107_vm3, %v120_v13  ;;  %v121_v15 = vpack.c.bf16 %v98_v14, %v98_v14 }
  0xeb   :  { %109 = vst.msk [vmem:[%s176_s2 + $0x4] sm:$0xf] %vm107_vm3, %v121_v15 }

// kernel: attention_forward.5
= control target key start
LH: loop header
LB: loop body
LE: loop exit
PB: predicated region body
PF: predicated region fallthrough
CT: control target
= control target key end

     0   :  { %v164_v1 = vmov 0.0   ;;  %vm165_vm0 = vmmov 0   ;;  %vm17_vm1 = vcmask 261120   ;;  %s212_s0 = inlined_call_operand.vmem [shape: bf16[16,32], index: 0, kind: input, shape index: {}]   ;;  %s213_s1 = inlined_call_operand.vmem [shape: bf16[32,32], index: 1, kind: input, shape index: {}]   ;;  %s214_s2 = inlined_call_operand.hbm [shape: f32[16,32], index: 2, kind: output, shape index: {}]  }
   0x1   :  { %v137_v0 = vld [vmem:[%s213_s1] sm:$0xff]   ;;  %124 = vmatprep.subr.bf16.mxu0 %v164_v1  ;;  %v138_v2 = vld [vmem:[%s213_s1 + $0x8] sm:$0xff]   ;;  %128 = vmatprep.mubr.msk.bf16.mxu0 %vm165_vm0, %v164_v1  ;;  %18 = vst.msk [vmem:[#allocation2] sm:$0xff] %vm17_vm1, %v164_v1  ;;  %19 = vst.msk [vmem:[#allocation2 + $0x8] sm:$0xff] %vm17_vm1, %v164_v1 }
   0x2   :  { %125 = vmatpush3.bf16.msra.mxu0 %v137_v0 }
   0x3   :  { %126 = vmatprep.subr.bf16.mxu0 %v164_v1 }
   0x4   :  { %7 = vsyncpa [#allocation4], 0  ;;  %v139_v3 = vld [vmem:[%s212_s0] sm:$0xff]   ;;  %s166_s1 = smov [#allocation3]  }
   0x5   :  { %s106_s15 = sshll.u32 %s166_s1, 4  ;;  %s107_s15 = int_to_ptr.vmem [resolvable:$true] %s106_s15 }
   0x6   :  { %127 = vmatpush3.bf16.msra.mxu0 %v138_v2  ;;  %s140_s0 = scalar_lea.vmem %s107_s15, 256  ;;  %p145_p1 = scmp.lt.s32.totalorder %s107_s15, %s107_s15 }
   0x7   :  { %p141_p0 = scmp.ne.s32.totalorder %s107_s15, %s140_s0  ;;  %p146_p2 = scmp.lt.s32.totalorder %s140_s0, %s140_s0 }
   0x8   :  { %v20_v4 = vld [vmem:[#allocation2] sm:$0xff]  ;;  %v21_v6 = vld [vmem:[#allocation2 + $0x8] sm:$0xff] }
   0x9   :  { %129 = vmatmul.mubr.msk.bf16.vlgmr.msra.gmra.mrb[0].mxu0 %vm17_vm1, %v139_v3  ;;  %p147_p3 = por %p146_p2, %p145_p1 }
   0xb   :  { %p148_p4 = pnand %p147_p3, %p141_p0 }
  0xdc   :  { %v83_v5 = vpop.f32.mrb[0].mxu0 }
  0xdd   :  { %v90_v7 = vadd.f32 %v83_v5, %v20_v4  ;;  %v130_v8 = vpop.f32.mrb[1].mxu0 }
  0xde   :  { %v86_v9 = vpop.f32.mrb[2].mxu0 }
  0xdf   :  { %92 = vst.msk [vmem:[#allocation2] sm:$0xff] %vm17_vm1, %v90_v7  ;;  %v91_v10 = vadd.f32 %v86_v9, %v21_v6  ;;  %v131_v11 = vpop.f32.mrb[3].mxu0 }
  0xe1   :  { %93 = vst.msk [vmem:[#allocation2 + $0x8] sm:$0xff] %vm17_vm1, %v91_v10 }
  0xe6   :  { %v97_v12 = vld [vmem:[#allocation2] sm:$0xff] }
  0xe7   :  { %99 = vst.msk [vmem:[#allocation3] sm:$0xff] %vm17_vm1, %v97_v12 }
  0xe8   :  { %v98_v13 = vld [vmem:[#allocation2 + $0x8] sm:$0xff] }
  0xe9   :  { %100 = vst.msk [vmem:[#allocation3 + $0x8] sm:$0xff] %vm17_vm1, %v98_v13 }
  0xea   :  { %151 = shalt.err (!%p148_p4)
}
  0xeb   :  { %s152_s18 = scalar_lea.hbm %s214_s2, 256 }
  0xec   :  { %p153_p5 = scmp.ne.s32.totalorder %s214_s2, %s152_s18  ;;  %p156_p6 = scmp.lt.u32.totalorder %s152_s18, %s214_s2 }
  0xee   :  { %p158_p7 = pnand %p156_p6, %p153_p5 }
  0xf0   :  { %161 = shalt.err (!%p158_p7)
}
  0xf1   :  { %s167_s23 = smov 128   ;;  %s168_s24 = smov 8  }
  0xf2   :  { %112 = dma.vmem_to_hbm [thread:$0]  %s107_s15, 256, %s214_s2, [#allocation4], %s167_s23, %s167_s23, %s168_s24  }
  0xf3   :  { %162 = dma.done.wait [#allocation4], 256  }
  0xf4   :  { %163 = vsyncadd [#allocation4], 4294967040 }
  0xf5   :  { %116 = vsyncpa [#allocation4], 1 }

// kernel: attention_forward.4
= control target key start
LH: loop header
LB: loop body
LE: loop exit
PB: predicated region body
PF: predicated region fallthrough
CT: control target
= control target key end

     0   :  { %s833_s12 = smov 0   ;;  %s835_s13 = smov 0   ;;  %s913_s0 = inlined_call_operand.vmem [shape: bf16[2,4,8,8], index: 0, kind: input, shape index: {}]   ;;  %s914_s1 = inlined_call_operand.vmem [shape: bf16[2,2,8,8], index: 1, kind: input, shape index: {}]   ;;  %s915_s2 = inlined_call_operand.vmem [shape: bf16[2,2,8,8], index: 2, kind: input, shape index: {}]   ;;  %s916_s3 = inlined_call_operand.vmem [shape: bf16[2,4,8,8], index: 3, kind: output, shape index: {}]  }
   0x1   :  { %s837_s14 = smov 0   ;;  %s839_s15 = smov 0  }
   0x2   :  { %s841_s16 = smov 0  }
   0x3 LB: > { %s35_s17 = sadd.s32 1, %s801_s14  ;;  %s39_s18 = sadd.s32 1, %s805_s15  ;;  %s809_s16 = sphi %s841_s16, %s13_s16   ;;  %s805_s15 = sphi %s839_s15, %s920_s15   ;;  %s801_s14 = sphi %s837_s14, %s919_s14   ;;  %s797_s13 = sphi %s835_s13, %s918_s13   ;;  %s793_s12 = sphi %s833_s12, %s917_s12  }
   0x4   : > { %p37_p0 = scmp.ge.s32.totalorder %s35_s17, 2  ;;  %p680_p1 = scmp.ge.s32.totalorder %s809_s16, 1 }
   0x5   : > { %p219_p2 = scmp.lt.s32.totalorder %s809_s16, 5 }
   0x6   : > { %s922_s17 = smov (%p37_p0, %s35_s17), 0  ;;  %s924_s18 = smov (!%p37_p0, %s39_s18), %s805_s15 }
   0x7   : > { %p220_p3 = pnand %p680_p1, %p219_p2  ;;  %p41_p4 = scmp.ge.s32.totalorder %s924_s18, 2 }
   0x8   : > { %vm336_vm0 = vcmask (!%p220_p3), 64512   ;;  %s681_s19 = sshll.u32 (!%p220_p3), %s793_s12, 1  ;;  %p280_p5 = scmp.lt.s32.totalorder (!%p220_p3), %s797_s13, 1  ;;  %v811_v0 = vmov (!%p220_p3), 0.0   ;;  %vm812_vm1 = vmmov (!%p220_p3), 0   ;;  %vm448_vm2 = vcmask (!%p220_p3), 1043456  }
   0x9   : > { %s926_s18 = smov (%p41_p4, %s924_s18), 0  ;;  %223 = sbr.rel (%p220_p3) target bundleno = 852 (0x354), region = 32 }
   0xa   : > { %337 = vst.msk [vmem:[#allocation4] sm:$0xff] (!%p220_p3), %vm336_vm0, %v811_v0  ;;  %338 = vst.msk [vmem:[#allocation4 + $0x8] sm:$0xff] (!%p220_p3), %vm336_vm0, %v811_v0  ;;  %704 = vmatprep.subr.bf16.mxu0 (!%p220_p3), %v811_v0  ;;  %p282_p6 = scmp.lt.s32.totalorder (!%p220_p3), %s681_s19, 3  ;;  %p294_p7 = scmp.lt.s32.totalorder (!%p220_p3), %s793_s12, 1  ;;  %706 = vmatprep.mubr.msk.bf16.mxu0 (!%p220_p3), %vm812_vm1, %v811_v0  ;;  %vm522_vm3 = vcmask (!%p220_p3), 60416  }
   0xb   : > { %710 = vmatprep.subr.bf16.mxu1 (!%p220_p3), %v811_v0  ;;  %712 = vmatprep.mubr.msk.bf16.mxu1 (!%p220_p3), %vm812_vm1, %v811_v0 }
  0x10   : > { %s928_s13 = smov (!%p280_p5, %s797_s13), 1  ;;  %s930_s19 = smov (!%p282_p6, %s681_s19), 3 }
  0x11   : > { %s682_s20 = sshll.u32 %s928_s13, 2  ;;  %s684_s23 = sshll.u32 %s928_s13, 1  ;;  %v440_v39 = vld [vmem:[#allocation4] sm:$0xff]  ;;  %v441_v41 = vld [vmem:[#allocation4 + $0x8] sm:$0xff] }
  0x12   : > { %s869_s21 = sadd.s32 %s682_s20, %s930_s19  ;;  %s932_s12 = smov (!%p294_p7, %s793_s12), 1 }
  0x13   : > { %s683_s22 = sshll.u32 %s869_s21, 2  ;;  %s300_s27 = sadd.s32 %s684_s23, %s932_s12 }
  0x14   : > { %s290_s26 = scalar_lea.vmem %s913_s0, %s683_s22  ;;  %s685_s28 = sshll.u32 %s300_s27, 2 }
  0x15   : > { %s302_s4 = scalar_lea.vmem %s914_s1, %s685_s28  ;;  %v758_v3 = vld [vmem:[%s290_s26] sm:$0xff]   ;;  %s313_s7 = scalar_lea.vmem %s915_s2, %s685_s28 }
  0x16   : > { %v341_v1 = vld [vmem:[%s302_s4] sm:$0xf]  ;;  %s325_s10 = scalar_lea.vmem %s916_s3, %s683_s22 }
  0x17   : > { %v353_v2 = vsel %vm336_vm0, %v341_v1, 0  ;;  %v342_v14 = vld [vmem:[%s313_s7] sm:$0xf] }
  0x18   : > { %705 = vmatpush3.bf16.xpose.msra.mxu0 %v353_v2  ;;  %v450_v15 = vsel %vm448_vm2, %v342_v14, 0 }
  0x19   : > { %711 = vmatpush3.bf16.msra.mxu1 %v450_v15 }
  0x1f   : > { %707 = vmatmul.mubr.msk.bf16.vlgmr.msra.gmra.mrb[0].mxu0 %vm336_vm0, %v758_v3 }
  0xf2   : > { %v389_v4 = vpop.f32.mrb[0].mxu0 }
  0xf3   : > { %v708_v5 = vpop.f32.mrb[1].mxu0  ;;  %v398_v6 = vsel %vm336_vm0, %v389_v4, -inf }
  0xf4   : > { %399 = vmax.xlane.f32.xlu0 %v398_v6  ;;  %v392_v7 = vpop.f32.mrb[2].mxu0 }
  0xf5   : > { %v709_v8 = vpop.f32.mrb[3].mxu0  ;;  %v401_v9 = vsel %vm336_vm0, %v392_v7, -inf }
  0xf8   : > { %402 = vmax.xlane.f32.xlu0 %v401_v9 }
 0x181   : > { %v400_v10 = vpop.xlane.xlu0 %399 }
 0x182   : > { %v404_v11 = vmax.f32 %v400_v10, -1e+30 }
 0x184   : > { %412 = vmax.xlane.f32.xlu1 %v404_v11  ;;  %v406_v18 = vsub.f32 -1e+30, %v404_v11 }
 0x185   : > { %v403_v12 = vpop.xlane.xlu0 %402 }
 0x186   : > { %v405_v13 = vmax.f32 %v403_v12, -1e+30  ;;  %v408_v22 = vmul.f32 1.442695, %v406_v18 }
 0x188   : > { %414 = vmax.xlane.f32.xlu1 %v405_v13  ;;  %v407_v23 = vsub.f32 -1e+30, %v405_v13 }
 0x18a   : > { %v410_v25 = vmul.f32 1.442695, %v407_v23 }
 0x211   : > { %v413_v16 = vpop.xlane.xlu1 %412 }
 0x212   : > { %v420_v17 = vsub.f32 %v389_v4, %v413_v16 }
 0x214   : > { %v422_v19 = vmul.f32 1.442695, %v420_v17 }
 0x215   : > { %v415_v20 = vpop.xlane.xlu1 %414 }
 0x216   : > { %759 = vpow2.f32 %v422_v19  ;;  %v421_v21 = vsub.f32 %v392_v7, %v415_v20 }
 0x218   : > { %v424_v24 = vmul.f32 1.442695, %v421_v21 }
 0x21a   : > { %761 = vpow2.f32 %v424_v24 }
 0x21b   : > { %763 = vpow2.f32 %v408_v22 }
 0x21c   : > { %765 = vpow2.f32 %v410_v25 }
 0x220   : > { %v760_v26 = vpop.eup %759 }
 0x221   : > { %v430_v27 = vsel %vm336_vm0, %v760_v26, 0.0 }
 0x222   : > { %431 = vadd.xlane.f32.xlu0 %v430_v27 }
 0x224   : > { %v762_v28 = vpop.eup %761 }
 0x225   : > { %v764_v29 = vpop.eup %763  ;;  %v433_v30 = vsel %vm336_vm0, %v762_v28, 0.0  ;;  %v444_v31 = vpack.c.bf16 %v762_v28, %v760_v26 }
 0x226   : > { %416 = vmax.xlane.f32.xlu0 %v764_v29  ;;  %434 = vadd.xlane.f32.xlu1 %v433_v30  ;;  %v766_v32 = vpop.eup %765  ;;  %v428_v33 = vmul.f32 0.0, %v764_v29 }
 0x227   : > { %713 = vmatmul.mubr.msk.bf16.vlgmr.msra.gmra.mrb[0].mxu1 %vm336_vm0, %v444_v31  ;;  %v429_v36 = vmul.f32 0.0, %v766_v32 }
 0x22a   : > { %418 = vmax.xlane.f32.xlu1 %v766_v32 }
 0x2af   : > { %v432_v34 = vpop.xlane.xlu0 %431 }
 0x2b0   : > { %v436_v35 = vadd.f32 %v432_v34, %v428_v33 }
 0x2b2   : > { %504 = vmax.xlane.f32.xlu0 %v436_v35 }
 0x2b3   : > { %v435_v37 = vpop.xlane.xlu1 %434  ;;  %v417_v40 = vpop.xlane.xlu0 %416 }
 0x2b4   : > { %v437_v38 = vadd.f32 %v435_v37, %v429_v36  ;;  %v442_v43 = vmul.f32 %v440_v39, %v417_v40 }
 0x2b6   : > { %506 = vmax.xlane.f32.xlu1 %v437_v38 }
 0x2b7   : > { %v419_v42 = vpop.xlane.xlu1 %418 }
 0x2b8   : > { %v443_v45 = vmul.f32 %v441_v41, %v419_v42 }
 0x2fa   : > { %v486_v44 = vpop.f32.mrb[0].mxu1 }
 0x2fb   : > { %v493_v46 = vadd.f32 %v486_v44, %v442_v43  ;;  %v714_v47 = vpop.f32.mrb[1].mxu1 }
 0x2fc   : > { %v489_v48 = vpop.f32.mrb[2].mxu1 }
 0x2fd   : > { %495 = vst.msk [vmem:[#allocation4] sm:$0xff] %vm336_vm0, %v493_v46  ;;  %v494_v49 = vadd.f32 %v489_v48, %v443_v45  ;;  %v715_v50 = vpop.f32.mrb[3].mxu1 }
 0x2ff   : > { %496 = vst.msk [vmem:[#allocation4 + $0x8] sm:$0xff] %vm336_vm0, %v494_v49 }
 0x304   : > { %v510_v54 = vld [vmem:[#allocation4] sm:$0xff] }
 0x306   : > { %v511_v58 = vld [vmem:[#allocation4 + $0x8] sm:$0xff] }
 0x33f   : > { %v505_v51 = vpop.xlane.xlu0 %504 }
 0x340   : > { %767 = vrcp.f32 %v505_v51 }
 0x343   : > { %v507_v52 = vpop.xlane.xlu1 %506 }
 0x344   : > { %769 = vrcp.f32 %v507_v52 }
 0x34a   : > { %v768_v53 = vpop.eup %767 }
 0x34b   : > { %v512_v55 = vmul.f32 %v768_v53, %v510_v54 }
 0x34d   : > { %v698_v56 = vpack.c.bf16 %v512_v55, %v512_v55 }
 0x34e   : > { %v770_v57 = vpop.eup %769 }
 0x34f   : > { %523 = vst.msk [vmem:[%s325_s10] sm:$0xf] %vm522_vm3, %v698_v56  ;;  %v513_v59 = vmul.f32 %v770_v57, %v511_v58 }
 0x351   : > { %v699_v60 = vpack.c.bf16 %v513_v59, %v513_v59 }
 0x353   : > { %524 = vst.msk [vmem:[%s325_s10 + $0x4] sm:$0xf] %vm522_vm3, %v699_v60 }
 0x354 PF: > { %s13_s16 = sadd.s32 1, %s809_s16   ;;  %s917_s12 = smov %s801_s14 }
 0x355   : > { %p10_p8 = scmp.ge.s32.totalorder %s13_s16, 6   ;;  %s918_s13 = smov %s805_s15 }
 0x356   : > { %s919_s14 = smov %s922_s17  ;;  %s920_s15 = smov %s926_s18 }
 0x357   :  { %12 = sbr.rel (!%p10_p8) target bundleno = 3 (0x3), region = 76 }

</bundles_post_ra>
